<compile_context>
chip_gen: v7x
topology: tpu7x:2x2x1
jax: 0.10.0
libtpu: 0.0.40
codegen_flags: <defaults>
</compile_context>

<pallas_src>
import functools

import jax
import jax.numpy as jnp
from jax.experimental import pallas as pl
from jax.experimental.pallas import tpu as pltpu

ALPHA = 0.25
GAMMA = 2
EPS = 1e-07

_LANES = 128
_SUBLANES = 8

# Per-TensorCore working-set target for the double-buffered pipeline.
# Safe on every generation once vmem_limit_bytes is raised:
#   v5e: 128 MiB physical (16 MiB scoped default -> overridden),
#   v6e: 128 MiB physical, v7x: 64 MiB physical per TC.
_WORKING_SET_BYTES = 24 * 1024 * 1024
_VMEM_LIMIT_CAP = 60 * 1024 * 1024


def _round_up(x, m):
    return ((x + m - 1) // m) * m


def _num_tensorcores():
    """TensorCores a single pallas_call can shard a 'parallel' grid axis over."""
    try:
        kind = jax.devices()[0].device_kind.lower()
    except Exception:
        return 1
    # Dual-TC ("megacore") parts: v4, v5p, v7x.  v5e / v6e are single-TC.
    if ("v7" in kind) or ("v4" in kind) or ("v5p" in kind) or kind.endswith(" v5"):
        return 2
    return 1


def _focal_ce_partial_kernel(logits_ref, targets_ref, partial_ref, *,
                             n_total, tile_n, tiles_per_part):
    """Accumulates sum_i cross_entropy_i over this partition's batch slice.

    logits_ref : (tile_n, C)  native dtype (bf16/f32); cast to f32 only on exp path
    targets_ref: (tile_n, 1)  int32 class indices
    partial_ref: (1, 8, 128)  f32 output block, resident across the reduction axis
    """
    p = pl.program_id(0)          # partition axis ("parallel"; a TC on dual-TC parts)
    t = pl.program_id(1)          # batch-tile reduction axis ("arbitrary")

    @pl.when(t == 0)
    def _init():
        partial_ref[...] = jnp.zeros_like(partial_ref)

    logits = logits_ref[...]                           # (tile_n, C) native dtype
    tgt = targets_ref[...]                             # (tile_n, 1) int32
    c = logits.shape[-1]

    # Logical row ids of this (possibly padded / duplicated) tile -> validity mask.
    tile_idx = p * tiles_per_part + t
    row_ids = tile_idx * tile_n + jax.lax.broadcasted_iota(
        jnp.int32, (tile_n, 1), 0)
    valid = row_ids < n_total                          # (tile_n, 1)

    # Row max and target pick are exact in the native dtype (no blanket f32 cast).
    row_max = jnp.max(logits, axis=-1, keepdims=True).astype(jnp.float32)

    # Gather logits[i, targets[i]] via a one-hot lane mask: a (1, C) lane iota
    # broadcast against the (tile_n, 1) targets (no full-size per-tile iota temp).
    col_iota = jax.lax.broadcasted_iota(jnp.int32, (1, c), 1)
    picked = jnp.sum(jnp.where(col_iota == tgt, logits, 0.0),
                     axis=-1, keepdims=True).astype(jnp.float32)  # 1-hot -> exact

    # Numerically-stable logsumexp; f32 only inside the exp path.
    shifted = logits.astype(jnp.float32) - row_max
    lse = row_max + jnp.log(
        jnp.sum(jnp.exp(shifted), axis=-1, keepdims=True))

    # Per-sample NLL; padded rows masked with a select (NOT a multiply: 0*NaN=NaN).
    ce_sum = jnp.sum(jnp.where(valid, lse - picked, 0.0))

    # Broadcast-accumulate into the lane-dense resident output block
    # (unmasked store); the wrapper reads element [p, 0, 0].
    partial_ref[...] += ce_sum


def focal_loss(logits, targets, alpha=ALPHA, gamma=GAMMA, reduction="mean",
               max_tile_rows=None):
    """logits: (N, C) float (f32 or bf16); targets: (N,) integer class indices."""
    n, c = logits.shape
    targets_2d = targets.astype(jnp.int32).reshape(n, 1)

    itemsize = jnp.dtype(logits.dtype).itemsize
    # dtype-native sublane multiple (bf16 packs 2 rows / sublane, int8 packs 4).
    sub = {1: 32, 2: 16}.get(itemsize, _SUBLANES)

    # --- byte-based tile sizing (lane padding + targets + f32 temps counted) ---
    #   2x native logits row (double-buffered, lane-padded): 2 * c_pad * itemsize
    #   2x padded (tile_n, 1) int32 targets row            : 2 * 128 * 4
    #   in-kernel f32 temporaries (cast / exp / select)    : ~3 * c_pad * 4
    c_pad = _round_up(c, _LANES)
    bytes_per_row = 2 * c_pad * itemsize + 2 * _LANES * 4 + 3 * c_pad * 4
    rows_by_vmem = max(sub, (_WORKING_SET_BYTES // bytes_per_row) // sub * sub)

    tile_n = min(rows_by_vmem, _round_up(n, sub))
    if max_tile_rows is not None:
        tile_n = min(tile_n, _round_up(max_tile_rows, sub))
    tile_n = max(sub, tile_n)

    num_tiles = pl.cdiv(n, tile_n)
    # 2-way split only where a second TensorCore exists (v7x / v4 / v5p); on
    # single-TC v5e/v6e it would only waste a clamped duplicate tile of work.
    num_parts = 2 if (_num_tensorcores() >= 2 and num_tiles >= 2) else 1
    tiles_per_part = pl.cdiv(num_tiles, num_parts)

    # Explicit scoped-VMEM limit covering the per-TensorCore working set.
    vmem_need = (tile_n * bytes_per_row
                 + num_parts * _SUBLANES * _LANES * 4
                 + (4 << 20))                          # compiler-scratch headroom
    vmem_limit = int(min(_VMEM_LIMIT_CAP, max(vmem_need, 16 << 20)))

    def _in_index(p_, t_):
        # Clamp so a (rare) fully-padded trailing tile re-reads a valid block;
        # its rows are masked inside the kernel via the *logical* row ids.
        tile = jnp.minimum(p_ * tiles_per_part + t_, num_tiles - 1)
        return (tile, 0)

    kernel = functools.partial(
        _focal_ce_partial_kernel,
        n_total=n, tile_n=tile_n, tiles_per_part=tiles_per_part)

    cost = pl.CostEstimate(
        flops=6 * n * c,
        transcendentals=n * c + n,
        bytes_accessed=n * c * itemsize + n * 4
        + num_parts * _SUBLANES * _LANES * 4,
    )

    partials = pl.pallas_call(
        kernel,
        out_shape=jax.ShapeDtypeStruct((num_parts, _SUBLANES, _LANES),
                                       jnp.float32),
        grid_spec=pltpu.PrefetchScalarGridSpec(
            num_scalar_prefetch=0,
            grid=(num_parts, tiles_per_part),
            in_specs=[
                pl.BlockSpec((tile_n, c), _in_index),
                pl.BlockSpec((tile_n, 1), _in_index),
            ],
            out_specs=pl.BlockSpec((1, _SUBLANES, _LANES),
                                   lambda p_, t_: (p_, 0, 0)),
        ),
        compiler_params=pltpu.CompilerParams(
            dimension_semantics=("parallel", "arbitrary"),
            vmem_limit_bytes=vmem_limit),
        cost_estimate=cost,
    )(logits, targets_2d)

    # Scalar epilogue (runs once; negligible): mean CE -> focal modulation.
    # TODO(synk): for N in the millions, switch to per-tile means / compensated
    # accumulation to limit f32 running-sum error.
    ce = jnp.sum(partials[:, 0, 0]) * jnp.float32(1.0 / n)
    pt = jnp.exp(-ce) + jnp.float32(EPS)
    one_minus_pt = 1.0 - pt
    if gamma == 2:
        # pt can exceed 1 by ~eps making (1 - pt) slightly negative; fine for
        # integer gamma (plain multiply).  Clamp only needed for non-integer gamma.
        mod = one_minus_pt * one_minus_pt
    else:
        mod = one_minus_pt ** gamma
    focal = jnp.float32(alpha) * mod * ce

    # focal is already a scalar; 'mean'/'sum'/'none' of a scalar are identical,
    # matching the PyTorch module's _reduce on a 0-d tensor.
    return focal


if __name__ == "__main__":
    key = jax.random.PRNGKey(0)
    k1, k2, k3, k4, k5, k6 = jax.random.split(key, 6)

    def reference(lg, tg):
        lf = lg.astype(jnp.float32)
        nn_ = lf.shape[0]
        lse = jax.nn.logsumexp(lf, axis=-1)
        picked = lf[jnp.arange(nn_), tg]
        ce = jnp.mean(lse - picked)
        pt = jnp.exp(-ce) + EPS
        return ALPHA * (1.0 - pt) ** GAMMA * ce

    # Case 1: small f32 problem (single tile, single partition).
    N1, C1 = 8, 32
    logits1 = jax.random.normal(k1, (N1, C1), dtype=jnp.float32)
    targets1 = jax.random.randint(k2, (N1,), 0, C1, dtype=jnp.int32)
    loss1 = focal_loss(logits1, targets1)
    jax.block_until_ready(loss1)
    assert jnp.allclose(loss1, reference(logits1, targets1),
                        rtol=1e-5, atol=1e-6), (loss1, reference(logits1, targets1))

    # Case 2: bf16 logits, N not a multiple of the (forced small) tile ->
    # exercises multi-tile pipelining, padded-row masking, bf16-native max/pick,
    # and (on dual-TC parts) both partitions.
    N2, C2 = 20, 32
    logits2 = jax.random.normal(k3, (N2, C2), dtype=jnp.float32).astype(jnp.bfloat16)
    targets2 = jax.random.randint(k4, (N2,), 0, C2, dtype=jnp.int32)
    loss2 = focal_loss(logits2, targets2, max_tile_rows=8)
    jax.block_until_ready(loss2)
    assert jnp.allclose(loss2, reference(logits2, targets2),
                        rtol=1e-5, atol=1e-6), (loss2, reference(logits2, targets2))

    # Case 3: larger f32 problem with an odd tile count -> exercises the
    # clamped/fully-masked duplicate tile path and the byte-based sizing math.
    N3, C3 = 3000, 96
    logits3 = jax.random.normal(k5, (N3, C3), dtype=jnp.float32)
    targets3 = jax.random.randint(k6, (N3,), 0, C3, dtype=jnp.int32)
    loss3 = focal_loss(logits3, targets3, max_tile_rows=640)
    jax.block_until_ready(loss3)
    assert jnp.allclose(loss3, reference(logits3, targets3),
                        rtol=3e-5, atol=1e-6), (loss3, reference(logits3, targets3))

    print("KERNEL_OK")
</pallas_src>

<mosaic_0001>
module attributes {stable_mosaic.version = 11 : i64} {
  func.func @_focal_ce_partial_kernel(%arg0: i32, %arg1: i32, %arg2: memref<8x32xf32, #tpu.memory_space<vmem>>, %arg3: memref<8x1xi32, #tpu.memory_space<vmem>>, %arg4: memref<1x8x128xf32, #tpu.memory_space<vmem>>) attributes {dimension_semantics = [#tpu.dimension_semantics<parallel>, #tpu.dimension_semantics<arbitrary>], iteration_bounds = array<i64: 1, 1>, scalar_prefetch = 0 : i64, scratch_operands = 0 : i64, tpu.core_type = #tpu.core_type<tc>, window_params = [{transform_indices = @transform_0, window_bounds = array<i64: 8, 32>}, {transform_indices = @transform_1, window_bounds = array<i64: 8, 1>}, {transform_indices = @transform_2, window_bounds = array<i64: 1, 8, 128>}]} {
    %c0_i32 = arith.constant 0 : i32
    %0 = arith.cmpi eq, %arg1, %c0_i32 : i32
    %1 = arith.extui %0 : i1 to i32
    %c0_i32_0 = arith.constant 0 : i32
    %2 = arith.cmpi ne, %1, %c0_i32_0 : i32
    scf.if %2 {
      %cst_16 = arith.constant 0.000000e+00 : f32
      %41 = vector.broadcast %cst_16 : f32 to vector<1x8x128xf32>
      %c0_17 = arith.constant 0 : index
      %c0_18 = arith.constant 0 : index
      %c0_19 = arith.constant 0 : index
      %42 = vector.load %arg4[%c0_17, %c0_18, %c0_19] : memref<1x8x128xf32, #tpu.memory_space<vmem>>, vector<1x8x128xf32>
      tpu.vector_store %arg4[%c0_17, %c0_18, %c0_19], %41 {strides = array<i32>} : memref<1x8x128xf32, #tpu.memory_space<vmem>>, vector<1x8x128xf32>,
    } else {
    }
    %c0 = arith.constant 0 : index
    %c0_1 = arith.constant 0 : index
    %3 = vector.load %arg2[%c0, %c0_1] : memref<8x32xf32, #tpu.memory_space<vmem>>, vector<8x32xf32>
    %c0_2 = arith.constant 0 : index
    %c0_3 = arith.constant 0 : index
    %4 = vector.load %arg3[%c0_2, %c0_3] : memref<8x1xi32, #tpu.memory_space<vmem>>, vector<8x1xi32>
    %c1_i32 = arith.constant 1 : i32
    %5 = arith.muli %arg0, %c1_i32 : i32
    %6 = arith.addi %5, %arg1 : i32
    %c8_i32 = arith.constant 8 : i32
    %7 = arith.muli %6, %c8_i32 : i32
    %8 = tpu.iota {dimensions = array<i32: 0>} : vector<8x1xi32>
    %9 = vector.broadcast %7 : i32 to vector<8x1xi32>
    %10 = arith.addi %9, %8 : vector<8x1xi32>
    %c8_i32_4 = arith.constant 8 : i32
    %11 = vector.broadcast %c8_i32_4 : i32 to vector<8x1xi32>
    %12 = arith.cmpi slt, %10, %11 : vector<8x1xi32>
    %cst = arith.constant dense<0xFF800000> : vector<8xf32>
    %13 = vector.multi_reduction <maximumf>, %3, %cst [1] : vector<8x32xf32> to vector<8xf32>
    %14 = vector.shape_cast %13 : vector<8xf32> to vector<8x1xf32>
    %15 = tpu.iota {dimensions = array<i32: 1>} : vector<1x32xi32>
    %16 = vector.broadcast %15 : vector<1x32xi32> to vector<8x32xi32>
    %17 = vector.broadcast %4 : vector<8x1xi32> to vector<8x32xi32>
    %18 = arith.cmpi eq, %16, %17 : vector<8x32xi32>
    %cst_5 = arith.constant 0.000000e+00 : f32
    %19 = vector.broadcast %cst_5 : f32 to vector<8x32xf32>
    %20 = arith.select %18, %3, %19 : vector<8x32xi1>, vector<8x32xf32>
    %cst_6 = arith.constant dense<0.000000e+00> : vector<8xf32>
    %21 = vector.multi_reduction <add>, %20, %cst_6 [1] : vector<8x32xf32> to vector<8xf32>
    %22 = vector.shape_cast %21 : vector<8xf32> to vector<8x1xf32>
    %23 = vector.broadcast %14 : vector<8x1xf32> to vector<8x32xf32>
    %24 = arith.subf %3, %23 : vector<8x32xf32>
    %25 = math.exp %24 : vector<8x32xf32>
    %cst_7 = arith.constant dense<0.000000e+00> : vector<8xf32>
    %26 = vector.multi_reduction <add>, %25, %cst_7 [1] : vector<8x32xf32> to vector<8xf32>
    %27 = vector.shape_cast %26 : vector<8xf32> to vector<8x1xf32>
    %28 = math.log %27 : vector<8x1xf32>
    %29 = arith.addf %14, %28 : vector<8x1xf32>
    %30 = arith.subf %29, %22 : vector<8x1xf32>
    %cst_8 = arith.constant 0.000000e+00 : f32
    %31 = vector.broadcast %cst_8 : f32 to vector<8x1xf32>
    %32 = arith.select %12, %30, %31 : vector<8x1xi1>, vector<8x1xf32>
    %33 = vector.shape_cast %32 : vector<8x1xf32> to vector<1x8x1xf32>
    %cst_9 = arith.constant dense<0.000000e+00> : vector<1xf32>
    %34 = vector.multi_reduction <add>, %33, %cst_9 [1, 2] : vector<1x8x1xf32> to vector<1xf32>
    %35 = vector.shape_cast %34 : vector<1xf32> to vector<1x1x1xf32>
    %36 = vector.extract %35[0, 0, 0] : f32 from vector<1x1x1xf32>
    %c0_10 = arith.constant 0 : index
    %c0_11 = arith.constant 0 : index
    %c0_12 = arith.constant 0 : index
    %37 = vector.load %arg4[%c0_10, %c0_11, %c0_12] : memref<1x8x128xf32, #tpu.memory_space<vmem>>, vector<1x8x128xf32>
    %38 = vector.broadcast %36 : f32 to vector<1x8x128xf32>
    %39 = arith.addf %37, %38 : vector<1x8x128xf32>
    %c0_13 = arith.constant 0 : index
    %c0_14 = arith.constant 0 : index
    %c0_15 = arith.constant 0 : index
    %40 = vector.load %arg4[%c0_13, %c0_14, %c0_15] : memref<1x8x128xf32, #tpu.memory_space<vmem>>, vector<1x8x128xf32>
    tpu.vector_store %arg4[%c0_13, %c0_14, %c0_15], %39 {strides = array<i32>} : memref<1x8x128xf32, #tpu.memory_space<vmem>>, vector<1x8x128xf32>,
    return
  }
  func.func @transform_0(%arg0: i32, %arg1: i32) -> (i32, i32) {
    %c1_i32 = arith.constant 1 : i32
    %0 = arith.muli %arg0, %c1_i32 : i32
    %1 = arith.addi %0, %arg1 : i32
    %c0_i32 = arith.constant 0 : i32
    %2 = arith.minsi %1, %c0_i32 : i32
    %c0_i32_0 = arith.constant 0 : i32
    %c0_i32_1 = arith.constant 0 : i32
    return %2, %c0_i32_0 : i32, i32
  }
  func.func @transform_1(%arg0: i32, %arg1: i32) -> (i32, i32) {
    %c1_i32 = arith.constant 1 : i32
    %0 = arith.muli %arg0, %c1_i32 : i32
    %1 = arith.addi %0, %arg1 : i32
    %c0_i32 = arith.constant 0 : i32
    %2 = arith.minsi %1, %c0_i32 : i32
    %c0_i32_0 = arith.constant 0 : i32
    %c0_i32_1 = arith.constant 0 : i32
    return %2, %c0_i32_0 : i32, i32
  }
  func.func @transform_2(%arg0: i32, %arg1: i32) -> (i32, i32, i32) {
    %c0_i32 = arith.constant 0 : i32
    %c0_i32_0 = arith.constant 0 : i32
    %c0_i32_1 = arith.constant 0 : i32
    return %arg0, %c0_i32, %c0_i32_0 : i32, i32, i32
  }
}

</mosaic_0001>

<bundles_post_ra>
// kernel: tpu_custom_call.1
= control target key start
LH: loop header
LB: loop body
LE: loop exit
PB: predicated region body
PF: predicated region fallthrough
CT: control target
= control target key end

     0   :  { %vm80_vm0 = vcmask 261120   ;;  %s218_s0 = inlined_call_operand.vmem [shape: f32[8,32], index: 0, kind: input, shape index: {}]   ;;  %s219_s1 = inlined_call_operand.vmem [shape: s32[8,1], index: 1, kind: input, shape index: {}]   ;;  %s220_s2 = inlined_call_operand.hbm [shape: f32[1,8,128], index: 2, kind: output, shape index: {}]  }
   0x1   :  { %v71_v0 = vld [vmem:[%s218_s0] sm:$0xff] }
   0x2   :  { %7 = vsyncpa [#allocation3], 0  ;;  %v81_v1 = vsel %vm80_vm0, %v71_v0, -inf  ;;  %v180_v2 = vmov 0   ;;  %v72_v3 = vld [vmem:[%s219_s1] sm:$0xff]  ;;  %v84_v7 = vlaneseq  ;;  %vm105_vm2 = vcmask 7168  }
   0x3   :  { %151 = vset.pattern.permute.xlu0 %v180_v2  ;;  %s181_s0 = smov [#allocation2]  }
   0x4   :  { %82 = vmax.xlane.f32.xlu0 %v81_v1  ;;  %v85_v8 = vand.u32 127, %v84_v7  ;;  %s126_s1 = sshll.u32 %s181_s0, 4  ;;  %s127_s1 = int_to_ptr.vmem [resolvable:$true] %s126_s1 }
   0x5   :  { %s156_s14 = scalar_lea.vmem %s127_s1, 128  ;;  %p161_p1 = scmp.lt.s32.totalorder %s127_s1, %s127_s1 }
   0x6   :  { %p157_p0 = scmp.ne.s32.totalorder %s127_s1, %s156_s14  ;;  %p162_p2 = scmp.lt.s32.totalorder %s156_s14, %s156_s14 }
   0x8   :  { %p163_p3 = por %p162_p2, %p161_p1 }
   0xa   :  { %p164_p4 = pnand %p163_p3, %p157_p0 }
  0x1a   :  { %87 = vperm.xlu0 %151, %v72_v3  }
  0x91   :  { %v83_v4 = vpop.xlane.xlu0 %82 }
  0x92   :  { %v94_v5 = vsub.f32 %v71_v0, %v83_v4 }
  0x94   :  { %v95_v6 = vmul.f32 1.442695, %v94_v5 }
  0x96   :  { %152 = vpow2.f32 %v95_v6 }
  0x99   :  { %v88_v9 = vpop.permute.xlu0 %87 }
  0x9a   :  { %vm89_vm1 = vcmp.eq.s32.totalorder %v85_v8, %v88_v9 }
  0x9b   :  { %v90_v11 = vsel %vm89_vm1, %v71_v0, 0.0 }
  0x9c   :  { %v91_v13 = vsel %vm80_vm0, %v90_v11, 0.0 }
  0xa0   :  { %v153_v10 = vpop.eup %152 }
  0xa1   :  { %v97_v12 = vsel %vm80_vm0, %v153_v10, 0.0 }
  0xa2   :  { %98 = vadd.xlane.f32.xlu1 %v97_v12 }
  0xa6   :  { %92 = vadd.xlane.f32.xlu1 %v91_v13 }
 0x12f   :  { %v99_v14 = vpop.xlane.xlu1 %98 }
 0x130   :  { %154 = vlog2.f32 %v99_v14 }
 0x133   :  { %v93_v17 = vpop.xlane.xlu1 %92 }
 0x13a   :  { %v155_v15 = vpop.eup %154 }
 0x13b   :  { %v101_v16 = vmul.f32 0.6931472, %v155_v15 }
 0x13d   :  { %v102_v18 = vadd.f32 %v101_v16, %v83_v4 }
 0x13f   :  { %v103_v19 = vsub.f32 %v102_v18, %v93_v17 }
 0x141   :  { %v106_v20 = vsel %vm105_vm2, %v103_v19, 0.0 }
 0x142   :  { %107 = vadd.xlane.f32.xlu1 %v106_v20 }
 0x1cf   :  { %v108_v21 = vpop.xlane.xlu1 %107 }
 0x1d0   :  { %v109_v22 = vrot.slane %v108_v21, 4 }
 0x1d2   :  { %v110_v23 = vadd.f32 %v109_v22, %v108_v21 }
 0x1d4   :  { %v111_v24 = vrot.slane %v110_v23, 2 }
 0x1d6   :  { %v112_v25 = vadd.f32 %v111_v24, %v110_v23 }
 0x1d8   :  { %v113_v26 = vrot.slane %v112_v25, 1 }
 0x1da   :  { %v114_v27 = vadd.f32 %v113_v26, %v112_v25 }
 0x1dc   :  { %146 = vpush %v114_v27 }
 0x20d   :  { %s147_s13 = spop %146 }
 0x20e   :  { %v117_v28 = vstv %s147_s13 }
 0x20f   :  { %119 = vst [vmem:[#allocation2] sm:$0xff] %v117_v28 }
 0x210   :  { %167 = shalt.err (!%p164_p4)
}
 0x211   :  { %s168_s17 = scalar_lea.hbm %s220_s2, 128 }
 0x212   :  { %p169_p5 = scmp.ne.s32.totalorder %s220_s2, %s168_s17  ;;  %p172_p6 = scmp.lt.u32.totalorder %s168_s17, %s220_s2 }
 0x214   :  { %p174_p7 = pnand %p172_p6, %p169_p5 }
 0x216   :  { %177 = shalt.err (!%p174_p7)
}
 0x217   :  { %129 = dma.vmem_to_hbm [thread:$0]  %s127_s1, 128, %s220_s2, [#allocation3]  }
 0x218   :  { %178 = dma.done.wait [#allocation3], 128  }
 0x219   :  { %179 = vsyncadd [#allocation3], 4294967168 }
 0x21a   :  { %133 = vsyncpa [#allocation3], 1 }

</bundles_post_ra>
